<compile_context>
chip_gen: v5e
topology: v5e:2x2
jax: 0.10.0
libtpu: 0.0.40
codegen_flags: <defaults>
</compile_context>

<pallas_src>
import math

import jax
import jax.numpy as jnp
from jax.experimental import pallas as pl
from jax.experimental.pallas import tpu as pltpu


# ----------------------------- configuration (small) -----------------------------
B = 2                     # batch
IN_CH, H, W = 3, 32, 32   # input image (NCHW)
LEVELS = 2
HIDDEN = 128              # hidden_channels (1024 in the real model); lane-aligned
MID = HIDDEN // 2         # PyramidPooler per-level projection width
POOL = 2                  # pool_size
PP = POOL * POOL
INPLANES = 16             # backbone.inplanes (deepest level channels)
C0, C1 = INPLANES, INPLANES // 2        # per-level channels (deepest first)
H0, W0 = 4, 4                           # deepest level spatial
H1, W1 = 8, 8                           # second level spatial
LINK_OUT = HIDDEN * 4                   # RegressionLink output_size == bn1 width
TN = 256                                # LINK_OUT tile (lane-aligned), streamed per grid step
OUT_SHAPE = (8, 2)                      # output_shape (e.g. 8 landmarks x 2)
OUT_NUMEL = math.prod(OUT_SHAPE)
BN_EPS = 1e-5
LRELU_SLOPE = 0.01


# ----------------------------- Pallas kernels -----------------------------
def pooler_kernel(x0_ref, x1_ref, w0_ref, w1_ref, wf_ref, g2_ref):
    """PyramidPooler + adaptive pool; runs once, emits g2 = (B, PP*HIDDEN) bf16."""
    f32, bf16 = jnp.float32, jnp.bfloat16

    # pooling (PyramidPooler level alignment + RegressionLink adaptive pool,
    # composed): uniform window mean as a VPU reduction over the leading axis.
    xp0 = jnp.mean(x0_ref[...], axis=0)            # (PP*B, C0)
    xp1 = jnp.mean(x1_ref[...], axis=0)            # (PP*B, C1)

    # PyramidPooler per-level 1x1 convs (bf16 operands, f32 accumulate)
    p0 = jnp.dot(xp0.astype(bf16), w0_ref[...], preferred_element_type=f32)   # (PP*B, MID)
    p1 = jnp.dot(xp1.astype(bf16), w1_ref[...], preferred_element_type=f32)   # (PP*B, MID)

    # fuse conv over the channel concat — one MXU push with K = 2*MID
    h = jnp.dot(jnp.concatenate([p0, p1], axis=-1).astype(bf16), wf_ref[...],
                preferred_element_type=f32)        # (PP*B, HIDDEN)

    # Flatten the PP pooled positions into the lane dim: rows of h are p-major
    # (p*B + b), so each p-block is a contiguous sublane slice and the lane
    # concat builds the RegressionLink input (B, PP*HIDDEN).  Done exactly once.
    g2 = jnp.concatenate([h[p * B:(p + 1) * B, :] for p in range(PP)], axis=-1)
    g2_ref[...] = g2.astype(g2_ref.dtype)          # bf16, lane-dense (512 lanes)


def link_kernel(g2_ref, wl_ref, bl_ref, bns_ref, bnb_ref, z_ref):
    """RegressionLink linear + bn1 + dropout(eval) + LeakyReLU for one LINK_OUT tile."""
    # ONE matmul per tile: (B, PP*HIDDEN) x (PP*HIDDEN, TN), bf16 in / f32 acc.
    z = jnp.dot(g2_ref[...], wl_ref[...], preferred_element_type=jnp.float32)
    z = z + bl_ref[...]
    # bn1 (inference stats) -> dropout (eval: identity) -> LeakyReLU (f32 VPU)
    z = z * bns_ref[...] + bnb_ref[...]
    z = jnp.where(z >= 0, z, LRELU_SLOPE * z)
    # lane-dense store (TN = 256 lanes, unmasked vst)
    z_ref[...] = z.astype(z_ref.dtype)


def run_pooler(x0s, x1s, params):
    # No grid: all operands are tiny; full arrays land in VMEM, single invocation.
    return pl.pallas_call(
        pooler_kernel,
        out_shape=jax.ShapeDtypeStruct((B, PP * HIDDEN), jnp.bfloat16),
    )(x0s, x1s, params["w0"], params["w1"], params["wf"])


def run_link(g2, params):
    nt = LINK_OUT // TN
    in_specs = [
        # g2 activation: whole-array block, resident across tiles
        pl.BlockSpec((B, PP * HIDDEN), lambda j: (0, 0)),
        # link weight + per-feature params: streamed (double-buffered) per tile
        pl.BlockSpec((PP * HIDDEN, TN), lambda j: (0, j)),   # wl
        pl.BlockSpec((1, TN), lambda j: (0, j)),             # bl
        pl.BlockSpec((1, TN), lambda j: (0, j)),             # bns
        pl.BlockSpec((1, TN), lambda j: (0, j)),             # bnb
    ]
    out_specs = pl.BlockSpec((B, TN), lambda j: (0, j))
    return pl.pallas_call(
        link_kernel,
        out_shape=jax.ShapeDtypeStruct((B, LINK_OUT), jnp.float32),
        grid=(nt,),
        in_specs=in_specs,
        out_specs=out_specs,
        compiler_params=pltpu.CompilerParams(
            # LINK_OUT tiles are fully independent -> megacore-splittable on v7x.
            dimension_semantics=("parallel",),
        ),
    )(g2, params["wl"], params["bl"], params["bns"], params["bnb"])


# ----------------------------- plain-JAX glue -----------------------------
def conv2d(x, w, stride):
    return jax.lax.conv_general_dilated(
        x, w, window_strides=(stride, stride), padding="SAME",
        dimension_numbers=("NCHW", "OIHW", "NCHW"))


def backbone(x, bp):
    # TODO(synk): stand-in for ResnetBackbone(DEFAULT_RESNET); returns pyramid
    # features deepest-first, matching backbone(x)[:levels].
    a = jax.nn.relu(conv2d(x, bp["c1"], 2))      # (B, 8, 16, 16)
    f1 = jax.nn.relu(conv2d(a, bp["c2"], 2))     # (B, C1, 8, 8)
    f0 = jax.nn.relu(conv2d(f1, bp["c3"], 2))    # (B, C0, 4, 4)
    return [f0, f1]


def to_pooled_slab(f_nchw):
    """NCHW level features -> (window, PP*B, C), pooled cells p-major.

    Layout plumbing only: the uniform pooling window for each (POOL, POOL)
    output cell goes to a leading axis so the kernel reduces it with plain
    VPU adds (jnp.mean over axis 0); channels stay last (lane dim).
    """
    b, c, h, w = f_nchw.shape
    fy, fx = h // POOL, w // POOL
    x = jnp.transpose(f_nchw, (0, 2, 3, 1))      # (b, h, w, c)
    x = x.reshape(b, POOL, fy, POOL, fx, c)      # (b, py, dy, px, dx, c)
    x = jnp.transpose(x, (2, 4, 1, 3, 0, 5))     # (dy, dx, py, px, b, c)
    return x.reshape(fy * fx, PP * b, c)         # rows: p*B + b


def init_params(key):
    ks = jax.random.split(key, 12)
    normal = lambda k, s, scale=0.1: (scale * jax.random.normal(k, s)).astype(jnp.float32)

    # backbone (plain JAX stand-in)
    bp = {"c1": normal(ks[0], (8, IN_CH, 3, 3)),
          "c2": normal(ks[1], (C1, 8, 3, 3)),
          "c3": normal(ks[2], (C0, C1, 3, 3))}

    # bn1 inference scale/shift with running_mean=0, running_var=1
    gamma = 1.0 + normal(ks[6], (1, LINK_OUT))
    beta = normal(ks[7], (1, LINK_OUT))
    bns = gamma / jnp.sqrt(1.0 + BN_EPS)
    bnb = beta

    params = {
        # PyramidPooler per-level 1x1 convs + fused fuse conv (bf16 MXU operands)
        "w0": normal(ks[3], (C0, MID)).astype(jnp.bfloat16),
        "w1": normal(ks[4], (C1, MID)).astype(jnp.bfloat16),
        "wf": normal(ks[5], (2 * MID, HIDDEN)).astype(jnp.bfloat16),
        # RegressionLink linear, flat (PP*HIDDEN, LINK_OUT); rows p-major to
        # match the pooler kernel's lane-concat of the PP pooled positions.
        "wl": normal(ks[8], (PP * HIDDEN, LINK_OUT)).astype(jnp.bfloat16),
        "bl": normal(ks[9], (1, LINK_OUT)),
        "bns": bns, "bnb": bnb,
        # final fc (tiny; applied in the wrapper on the lane-dense kernel output)
        "wfc": normal(ks[10], (LINK_OUT, OUT_NUMEL)),
        "bfc": jnp.zeros((1, OUT_NUMEL), jnp.float32),
    }
    return bp, params


@jax.jit
def pyramid_regression_forward(x, bp, params):
    f0, f1 = backbone(x, bp)                 # NCHW pyramid, deepest first
    x0s = to_pooled_slab(f0)                 # (4,  PP*B, C0)
    x1s = to_pooled_slab(f1)                 # (16, PP*B, C1)
    g2 = run_pooler(x0s, x1s, params)        # (B, PP*HIDDEN) bf16 — RegressionLink input
    z = run_link(g2, params)                 # (B, LINK_OUT) f32 — pre-fc activation
    out = jnp.dot(z, params["wfc"]) + params["bfc"]   # final fc (16-wide) in wrapper
    return out.reshape(-1, *OUT_SHAPE)       # x.view(-1, *output_shape)


if __name__ == "__main__":
    key = jax.random.PRNGKey(0)
    k_in, k_par = jax.random.split(key)
    x = jax.random.normal(k_in, (B, IN_CH, H, W), jnp.float32)
    bp, params = init_params(k_par)

    y = pyramid_regression_forward(x, bp, params)
    y = jax.block_until_ready(y)
    assert y.shape == (B, *OUT_SHAPE), y.shape
    assert bool(jnp.all(jnp.isfinite(y)))
    print("KERNEL_OK")
</pallas_src>

<mosaic_0001>
module attributes {stable_mosaic.version = 11 : i64} {
  func.func @pooler_kernel(%arg0: memref<4x8x16xf32, #tpu.memory_space<vmem>>, %arg1: memref<16x8x8xf32, #tpu.memory_space<vmem>>, %arg2: memref<16x64xbf16, #tpu.memory_space<vmem>>, %arg3: memref<8x64xbf16, #tpu.memory_space<vmem>>, %arg4: memref<128x128xbf16, #tpu.memory_space<vmem>>, %arg5: memref<2x512xbf16, #tpu.memory_space<vmem>>) attributes {dimension_semantics = [], scalar_prefetch = 0 : i64, scratch_operands = 0 : i64, tpu.core_type = #tpu.core_type<tc>} {
    %c0 = arith.constant 0 : index
    %c0_0 = arith.constant 0 : index
    %c0_1 = arith.constant 0 : index
    %0 = vector.load %arg0[%c0, %c0_0, %c0_1] : memref<4x8x16xf32, #tpu.memory_space<vmem>>, vector<4x8x16xf32>
    %cst = arith.constant dense<0.000000e+00> : vector<8x16xf32>
    %1 = vector.multi_reduction <add>, %0, %cst [0] : vector<4x8x16xf32> to vector<8x16xf32>
    %cst_2 = arith.constant 4.000000e+00 : f32
    %2 = vector.broadcast %cst_2 : f32 to vector<8x16xf32>
    %3 = arith.divf %1, %2 : vector<8x16xf32>
    %c0_3 = arith.constant 0 : index
    %c0_4 = arith.constant 0 : index
    %c0_5 = arith.constant 0 : index
    %4 = vector.load %arg1[%c0_3, %c0_4, %c0_5] : memref<16x8x8xf32, #tpu.memory_space<vmem>>, vector<16x8x8xf32>
    %cst_6 = arith.constant dense<0.000000e+00> : vector<8x8xf32>
    %5 = vector.multi_reduction <add>, %4, %cst_6 [0] : vector<16x8x8xf32> to vector<8x8xf32>
    %cst_7 = arith.constant 1.600000e+01 : f32
    %6 = vector.broadcast %cst_7 : f32 to vector<8x8xf32>
    %7 = arith.divf %5, %6 : vector<8x8xf32>
    %8 = arith.truncf %3 : vector<8x16xf32> to vector<8x16xbf16>
    %c0_8 = arith.constant 0 : index
    %c0_9 = arith.constant 0 : index
    %9 = vector.load %arg2[%c0_8, %c0_9] : memref<16x64xbf16, #tpu.memory_space<vmem>>, vector<16x64xbf16>
    %cst_10 = arith.constant dense<0.000000e+00> : vector<8x64xf32>
    %10 = tpu.matmul %8, %9, %cst_10 {dimension_numbers = #tpu.dot_dimension_numbers<[1], [0], [0], [1], [0, 0, 1, 1], [], []>} : vector<8x16xbf16>, vector<16x64xbf16>, vector<8x64xf32> -> vector<8x64xf32>
    %11 = arith.truncf %7 : vector<8x8xf32> to vector<8x8xbf16>
    %c0_11 = arith.constant 0 : index
    %c0_12 = arith.constant 0 : index
    %12 = vector.load %arg3[%c0_11, %c0_12] : memref<8x64xbf16, #tpu.memory_space<vmem>>, vector<8x64xbf16>
    %cst_13 = arith.constant dense<0.000000e+00> : vector<8x64xf32>
    %13 = tpu.matmul %11, %12, %cst_13 {dimension_numbers = #tpu.dot_dimension_numbers<[1], [0], [0], [1], [0, 0, 1, 1], [], []>} : vector<8x8xbf16>, vector<8x64xbf16>, vector<8x64xf32> -> vector<8x64xf32>
    %14 = tpu.concatenate %10, %13 in 1 : vector<8x64xf32>, vector<8x64xf32> -> vector<8x128xf32>
    %15 = arith.truncf %14 : vector<8x128xf32> to vector<8x128xbf16>
    %c0_14 = arith.constant 0 : index
    %c0_15 = arith.constant 0 : index
    %16 = vector.load %arg4[%c0_14, %c0_15] : memref<128x128xbf16, #tpu.memory_space<vmem>>, vector<128x128xbf16>
    %cst_16 = arith.constant dense<0.000000e+00> : vector<8x128xf32>
    %17 = tpu.matmul %15, %16, %cst_16 {dimension_numbers = #tpu.dot_dimension_numbers<[1], [0], [0], [1], [0, 0, 1, 1], [], []>} : vector<8x128xbf16>, vector<128x128xbf16>, vector<8x128xf32> -> vector<8x128xf32>
    %18 = vector.extract_strided_slice %17 {offsets = [0, 0], sizes = [2, 128], strides = [1, 1]} : vector<8x128xf32> to vector<2x128xf32>
    %19 = vector.extract_strided_slice %17 {offsets = [2, 0], sizes = [2, 128], strides = [1, 1]} : vector<8x128xf32> to vector<2x128xf32>
    %20 = vector.extract_strided_slice %17 {offsets = [4, 0], sizes = [2, 128], strides = [1, 1]} : vector<8x128xf32> to vector<2x128xf32>
    %21 = vector.extract_strided_slice %17 {offsets = [6, 0], sizes = [2, 128], strides = [1, 1]} : vector<8x128xf32> to vector<2x128xf32>
    %22 = tpu.concatenate %18, %19, %20, %21 in 1 : vector<2x128xf32>, vector<2x128xf32>, vector<2x128xf32>, vector<2x128xf32> -> vector<2x512xf32>
    %23 = arith.truncf %22 : vector<2x512xf32> to vector<2x512xbf16>
    %c0_17 = arith.constant 0 : index
    %c0_18 = arith.constant 0 : index
    %24 = vector.load %arg5[%c0_17, %c0_18] : memref<2x512xbf16, #tpu.memory_space<vmem>>, vector<2x512xbf16>
    tpu.vector_store %arg5[%c0_17, %c0_18], %23 {strides = array<i32>} : memref<2x512xbf16, #tpu.memory_space<vmem>>, vector<2x512xbf16>,
    return
  }
}

module attributes {stable_mosaic.version = 11 : i64} {
  func.func @link_kernel(%arg0: i32, %arg1: memref<2x512xbf16, #tpu.memory_space<vmem>>, %arg2: memref<512x256xbf16, #tpu.memory_space<vmem>>, %arg3: memref<1x256xf32, #tpu.memory_space<vmem>>, %arg4: memref<1x256xf32, #tpu.memory_space<vmem>>, %arg5: memref<1x256xf32, #tpu.memory_space<vmem>>, %arg6: memref<2x256xf32, #tpu.memory_space<vmem>>) attributes {dimension_semantics = [#tpu.dimension_semantics<parallel>], iteration_bounds = array<i64: 2>, scalar_prefetch = 0 : i64, scratch_operands = 0 : i64, tpu.core_type = #tpu.core_type<tc>, window_params = [{pipeline_mode = #tpu.pipeline_mode<synchronous>, transform_indices = @transform_0, window_bounds = array<i64: 2, 512>}, {transform_indices = @transform_1, window_bounds = array<i64: 512, 256>}, {transform_indices = @transform_2, window_bounds = array<i64: 1, 256>}, {transform_indices = @transform_3, window_bounds = array<i64: 1, 256>}, {transform_indices = @transform_4, window_bounds = array<i64: 1, 256>}, {transform_indices = @transform_5, window_bounds = array<i64: 2, 256>}]} {
    %c0 = arith.constant 0 : index
    %c0_0 = arith.constant 0 : index
    %0 = vector.load %arg1[%c0, %c0_0] : memref<2x512xbf16, #tpu.memory_space<vmem>>, vector<2x512xbf16>
    %c0_1 = arith.constant 0 : index
    %c0_2 = arith.constant 0 : index
    %1 = vector.load %arg2[%c0_1, %c0_2] : memref<512x256xbf16, #tpu.memory_space<vmem>>, vector<512x256xbf16>
    %cst = arith.constant dense<0.000000e+00> : vector<2x256xf32>
    %2 = tpu.matmul %0, %1, %cst {dimension_numbers = #tpu.dot_dimension_numbers<[1], [0], [0], [1], [0, 0, 1, 1], [], []>} : vector<2x512xbf16>, vector<512x256xbf16>, vector<2x256xf32> -> vector<2x256xf32>
    %c0_3 = arith.constant 0 : index
    %c0_4 = arith.constant 0 : index
    %3 = vector.load %arg3[%c0_3, %c0_4] : memref<1x256xf32, #tpu.memory_space<vmem>>, vector<1x256xf32>
    %4 = vector.broadcast %3 : vector<1x256xf32> to vector<2x256xf32>
    %5 = arith.addf %2, %4 : vector<2x256xf32>
    %c0_5 = arith.constant 0 : index
    %c0_6 = arith.constant 0 : index
    %6 = vector.load %arg4[%c0_5, %c0_6] : memref<1x256xf32, #tpu.memory_space<vmem>>, vector<1x256xf32>
    %7 = vector.broadcast %6 : vector<1x256xf32> to vector<2x256xf32>
    %8 = arith.mulf %5, %7 : vector<2x256xf32>
    %c0_7 = arith.constant 0 : index
    %c0_8 = arith.constant 0 : index
    %9 = vector.load %arg5[%c0_7, %c0_8] : memref<1x256xf32, #tpu.memory_space<vmem>>, vector<1x256xf32>
    %10 = vector.broadcast %9 : vector<1x256xf32> to vector<2x256xf32>
    %11 = arith.addf %8, %10 : vector<2x256xf32>
    %cst_9 = arith.constant 0.000000e+00 : f32
    %12 = vector.broadcast %cst_9 : f32 to vector<2x256xf32>
    %13 = arith.cmpf oge, %11, %12 : vector<2x256xf32>
    %cst_10 = arith.constant 0.00999999977 : f32
    %14 = vector.broadcast %cst_10 : f32 to vector<2x256xf32>
    %15 = arith.mulf %14, %11 : vector<2x256xf32>
    %16 = arith.select %13, %11, %15 : vector<2x256xi1>, vector<2x256xf32>
    %c0_11 = arith.constant 0 : index
    %c0_12 = arith.constant 0 : index
    %17 = vector.load %arg6[%c0_11, %c0_12] : memref<2x256xf32, #tpu.memory_space<vmem>>, vector<2x256xf32>
    tpu.vector_store %arg6[%c0_11, %c0_12], %16 {strides = array<i32>} : memref<2x256xf32, #tpu.memory_space<vmem>>, vector<2x256xf32>,
    return
  }
  func.func @transform_0(%arg0: i32) -> (i32, i32) {
    %c0_i32 = arith.constant 0 : i32
    %c0_i32_0 = arith.constant 0 : i32
    %c0_i32_1 = arith.constant 0 : i32
    return %c0_i32, %c0_i32_0 : i32, i32
  }
  func.func @transform_1(%arg0: i32) -> (i32, i32) {
    %c0_i32 = arith.constant 0 : i32
    %c0_i32_0 = arith.constant 0 : i32
    return %c0_i32, %arg0 : i32, i32
  }
  func.func @transform_2(%arg0: i32) -> (i32, i32) {
    %c0_i32 = arith.constant 0 : i32
    %c0_i32_0 = arith.constant 0 : i32
    return %c0_i32, %arg0 : i32, i32
  }
  func.func @transform_3(%arg0: i32) -> (i32, i32) {
    %c0_i32 = arith.constant 0 : i32
    %c0_i32_0 = arith.constant 0 : i32
    return %c0_i32, %arg0 : i32, i32
  }
  func.func @transform_4(%arg0: i32) -> (i32, i32) {
    %c0_i32 = arith.constant 0 : i32
    %c0_i32_0 = arith.constant 0 : i32
    return %c0_i32, %arg0 : i32, i32
  }
  func.func @transform_5(%arg0: i32) -> (i32, i32) {
    %c0_i32 = arith.constant 0 : i32
    %c0_i32_0 = arith.constant 0 : i32
    return %c0_i32, %arg0 : i32, i32
  }
}

</mosaic_0001>

<bundles_post_ra>
// kernel: pyramid_regression_forward.2
= control target key start
LH: loop header
LB: loop body
LE: loop exit
PB: predicated region body
PF: predicated region fallthrough
CT: control target
= control target key end

     0   :  { %vm127_vm0 = vcmask 1043456   ;;  %vm57_vm1 = vcmask 64512   ;;  %v312_v14 = vmov 16.0   ;;  %vm25_vm2 = vcmask 130048   ;;  %s314_s20 = smov 64   ;;  %s460_s3 = inlined_call_operand.vmem [shape: bf16[8,64], index: 3, kind: input, shape index: {}]   ;;  %s461_s1 = inlined_call_operand.vmem [shape: f32[16,8,8], index: 1, kind: input, shape index: {}]   ;;  %s462_s2 = inlined_call_operand.vmem [shape: bf16[16,64], index: 2, kind: input, shape index: {}]   ;;  %s463_s0 = inlined_call_operand.vmem [shape: f32[4,8,16], index: 0, kind: input, shape index: {}]   ;;  %s464_s4 = inlined_call_operand.vmem [shape: bf16[128,128], index: 4, kind: input, shape index: {}]   ;;  %s465_s5 = inlined_call_operand.vmem [shape: bf16[2,512], index: 5, kind: output, shape index: {}]  }
   0x1   :  { %v123_v0 = vld [vmem:[%s460_s3] sm:$0xf]  ;;  %v42_v2 = vld [vmem:[%s461_s1 + $0x8] sm:$0xff]  ;;  %v43_v4 = vld [vmem:[%s461_s1 + $0x10] sm:$0xff]  ;;  %308 = vrcp.f32 %v312_v14  ;;  %v313_v28 = vmov 4.0   ;;  %vm148_vm5 = vcmask 523264  }
   0x2   :  { %v41_v1 = vld [vmem:[%s461_s1] sm:$0xff]  ;;  %v129_v3 = vsel %vm127_vm0, %v123_v0, 0  ;;  %v44_v5 = vld [vmem:[%s461_s1 + $0x18] sm:$0xff]  ;;  %v59_v7 = vsel %vm57_vm1, %v42_v2, 0.0  ;;  %v61_v10 = vsel %vm57_vm1, %v43_v4, 0.0  ;;  %v46_v12 = vld [vmem:[%s461_s1 + $0x28] sm:$0xff]  ;;  %310 = vrcp.f32 %v313_v28 }
   0x3   :  { %v58_v6 = vsel %vm57_vm1, %v41_v1, 0.0  ;;  %138 = vmatpush.bf16.msra.mxu1 %v129_v3  ;;  %v45_v8 = vld [vmem:[%s461_s1 + $0x20] sm:$0xff]  ;;  %v63_v11 = vsel %vm57_vm1, %v44_v5, 0.0  ;;  %v47_v17 = vld [vmem:[%s461_s1 + $0x30] sm:$0xff]  ;;  %v67_v19 = vsel %vm57_vm1, %v46_v12, 0.0  ;;  %v48_v20 = vld [vmem:[%s461_s1 + $0x38] sm:$0xff] }
   0x4   :  { %v60_v9 = vadd.f32 %v59_v7, %v58_v6  ;;  %v65_v15 = vsel %vm57_vm1, %v45_v8, 0.0  ;;  %v296_v16 = vld [vmem:[%s462_s2] sm:$0xff]  ;;  %v22_v23 = vld [vmem:[%s463_s0 + $0x8] sm:$0xff]  ;;  %v69_v24 = vsel %vm57_vm1, %v47_v17, 0.0  ;;  %v71_v29 = vsel %vm57_vm1, %v48_v20, 0.0  ;;  %v23_v34 = vld [vmem:[%s463_s0 + $0x10] sm:$0xff] }
   0x5   :  { %116 = vmatpush.bf16.msra.mxu0 %v296_v16  ;;  %v21_v22 = vld [vmem:[%s463_s0] sm:$0xff]  ;;  %v27_v31 = vsel %vm25_vm2, %v22_v23, 0.0  ;;  %v50_v32 = vld [vmem:[%s461_s1 + $0x48] sm:$0xff]  ;;  %v51_v37 = vld [vmem:[%s461_s1 + $0x50] sm:$0xff]  ;;  %v29_v41 = vsel %vm25_vm2, %v23_v34, 0.0  ;;  %vm242_vm6 = vcmask 1040384  }
   0x6   :  { %v62_v13 = vadd.f32 %v61_v10, %v60_v9  ;;  %v49_v26 = vld [vmem:[%s461_s1 + $0x40] sm:$0xff]  ;;  %v26_v30 = vsel %vm25_vm2, %v21_v22, 0.0  ;;  %v75_v40 = vsel %vm57_vm1, %v50_v32, 0.0  ;;  %v52_v43 = vld [vmem:[%s461_s1 + $0x58] sm:$0xff]  ;;  %v77_v46 = vsel %vm57_vm1, %v51_v37, 0.0  ;;  %v54_v55 = vld [vmem:[%s461_s1 + $0x68] sm:$0xff] }
   0x7   :  { %v309_v25 = vpop.eup %308  ;;  %v73_v35 = vsel %vm57_vm1, %v49_v26, 0.0  ;;  %v28_v39 = vadd.f32 %v27_v31, %v26_v30  ;;  %v24_v45 = vld [vmem:[%s463_s0 + $0x18] sm:$0xff]  ;;  %v53_v49 = vld [vmem:[%s461_s1 + $0x60] sm:$0xff]  ;;  %v79_v52 = vsel %vm57_vm1, %v52_v43, 0.0  ;;  %v55_v60 = vld [vmem:[%s461_s1 + $0x70] sm:$0xff]  ;;  %v83_v63 = vsel %vm57_vm1, %v54_v55, 0.0 }
   0x8   :  { %v64_v18 = vadd.f32 %v63_v11, %v62_v13  ;;  %v90_v36 = vmul.f32 16.0, %v309_v25  ;;  %v311_v42 = vpop.eup %310  ;;  %v31_v53 = vsel %vm25_vm2, %v24_v45, 0.0  ;;  %v81_v57 = vsel %vm57_vm1, %v53_v49, 0.0  ;;  %v56_v1 = vld [vmem:[%s461_s1 + $0x78] sm:$0xff]  ;;  %v303_v16 = vld [vmem:[%s464_s4 + $0x30] sm:$0xff]  ;;  %v302_v17 = vld [vmem:[%s464_s4 + $0x28] sm:$0xff] }
   0x9   :  { %v34_v48 = vmul.f32 4.0, %v311_v42  ;;  %v30_v51 = vadd.f32 %v29_v41, %v28_v39  ;;  %vm38_vm3 = vweird.f32 %v311_v42  ;;  %v85_v3 = vsel %vm57_vm1, %v55_v60, 0.0  ;;  %v298_v22 = vld [vmem:[%s464_s4 + $0x8] sm:$0xff]  ;;  %v297_v26 = vld [vmem:[%s464_s4] sm:$0xff] }
   0xa   :  { %v66_v21 = vadd.f32 %v65_v15, %v64_v18  ;;  %v91_v47 = vsub.f32 1.0, %v90_v36  ;;  %vm94_vm4 = vweird.f32 %v309_v25  ;;  %v87_v8 = vsel %vm57_vm1, %v56_v1, 0.0  ;;  %v304_v15 = vld [vmem:[%s464_s4 + $0x38] sm:$0xff]  ;;  %v301_v18 = vld [vmem:[%s464_s4 + $0x20] sm:$0xff] }
   0xb   :  { %v35_v54 = vsub.f32 1.0, %v34_v48  ;;  %v32_v62 = vadd.f32 %v31_v53, %v30_v51  ;;  %215 = vmatpush.bf16.msra.mxu2 %v304_v15  ;;  %vm246_vm7 = vcmask 1042434   ;;  %vm250_vm8 = vcmask 1041408  }
   0xc   :  { %v68_v27 = vadd.f32 %v67_v19, %v66_v21  ;;  %v92_v58 = vmul.f32 %v309_v25, %v91_v47  ;;  %v300_v19 = vld [vmem:[%s464_s4 + $0x18] sm:$0xff]  ;;  %v299_v21 = vld [vmem:[%s464_s4 + $0x10] sm:$0xff] }
   0xd   :  { %v36_v59 = vmul.f32 %v311_v42, %v35_v54 }
   0xe   :  { %v70_v33 = vadd.f32 %v69_v24, %v68_v27  ;;  %v93_v4 = vadd.f32 %v309_v25, %v92_v58 }
   0xf   :  { %v37_v0 = vadd.f32 %v311_v42, %v36_v59  ;;  %216 = vmatpush.bf16.msra.mxu2 %v303_v16 }
  0x10   :  { %v72_v38 = vadd.f32 %v71_v29, %v70_v33  ;;  %v95_v11 = vsel %vm94_vm4, %v309_v25, %v93_v4 }
  0x11   :  { %v39_v5 = vsel %vm38_vm3, %v311_v42, %v37_v0 }
  0x12   :  { %v74_v44 = vadd.f32 %v73_v35, %v72_v38  ;;  %v40_v7 = vmul.f32 %v39_v5, %v32_v62 }
  0x13   :  { %217 = vmatpush.bf16.msra.mxu2 %v302_v17 }
  0x14   :  { %v76_v50 = vadd.f32 %v75_v40, %v74_v44  ;;  %v97_v10 = vpack.c.bf16 %v40_v7, %v40_v7 }
  0x16   :  { %v78_v56 = vadd.f32 %v77_v46, %v76_v50  ;;  %262 = vmatmul.msk.bf16.vlgmr.msra.gmra.mxu0 %vm25_vm2, %v97_v10 }
  0x17   :  { %218 = vmatpush.bf16.msra.mxu2 %v301_v18 }
  0x18   :  { %v80_v61 = vadd.f32 %v79_v52, %v78_v56 }
  0x1a   :  { %v82_v2 = vadd.f32 %v81_v57, %v80_v61 }
  0x1b   :  { %219 = vmatpush.bf16.msra.mxu2 %v300_v19 }
  0x1c   :  { %v84_v6 = vadd.f32 %v83_v63, %v82_v2 }
  0x1e   :  { %v86_v9 = vadd.f32 %v85_v3, %v84_v6 }
  0x1f   :  { %220 = vmatpush.bf16.msra.mxu2 %v299_v21 }
  0x20   :  { %v88_v12 = vadd.f32 %v87_v8, %v86_v9 }
  0x22   :  { %v96_v13 = vmul.f32 %v95_v11, %v88_v12 }
  0x23   :  { %221 = vmatpush.bf16.msra.mxu2 %v298_v22 }
  0x24   :  { %v122_v14 = vpack.c.bf16 %v96_v13, %v96_v13 }
  0x26   :  { %263 = vmatmul.msk.bf16.vlgmr.msra.gmra.mxu1 %vm57_vm1, %v122_v14 }
  0x27   :  { %222 = vmatpush.bf16.msra.mxu2 %v297_v26 }
  0x93   :  { %v118_v20 = vpop.f32.mrf.mxu0 }
  0x9b   :  { %v120_v24 = vpop.f32.mrf.mxu0 }
  0xa3   :  { %v140_v23 = vpop.f32.mrf.mxu1 }
  0xa4   :  { %145 = vrot.lane.b32.xlu0 %v140_v23, %s314_s20 }
  0xab   :  { %v142_v25 = vpop.f32.mrf.mxu1 }
 0x116   :  { %v146_v27 = vpop.permute.xlu0 %145 }
 0x117   :  { %v149_v28 = vsel %vm148_vm5, %v118_v20, %v146_v27 }
 0x118   :  { %v150_v29 = vpack.c.bf16 %v149_v28, %v149_v28 }
 0x11a   :  { %223 = vmatmul.bf16.vlgmr.msra.gmra.mxu2 %v150_v29 }
 0x19d   :  { %v224_v30 = vpop.f32.mrf.mxu2 }
 0x19e   :  { %v229_v31 = vrot.slane %v224_v30, 2  ;;  %v231_v32 = vrot.slane %v224_v30, 4  ;;  %v233_v33 = vrot.slane %v224_v30, 6 }
 0x1a0   :  { %v235_v34 = vpack.c.bf16 %v229_v31, %v224_v30  ;;  %v236_v35 = vpack.c.bf16 %v233_v33, %v231_v32 }
 0x1a2   :  { %v239_v36 = vrot.slane %v235_v34, 3  ;;  %v240_v37 = vrot.slane %v236_v35, 6  ;;  %v241_v38 = vrot.slane %v236_v35, 1 }
 0x1a4   :  { %v245_v39 = vsel %vm242_vm6, %v235_v34, %v239_v36  ;;  %v249_v40 = vsel %vm246_vm7, %v240_v37, %v241_v38 }
 0x1a5   :  { %v251_v41 = vsel %vm250_vm8, %v245_v39, %v249_v40  ;;  %v226_v42 = vpop.f32.mrf.mxu2 }
 0x1a6   :  { %253 = vst [vmem:[%s465_s5] sm:$0xf] %v251_v41 }

// kernel: pyramid_regression_forward.3
= control target key start
LH: loop header
LB: loop body
LE: loop exit
PB: predicated region body
PF: predicated region fallthrough
CT: control target
= control target key end

     0   :  { %s1610_s18 = smov 0   ;;  %s1612_s19 = smov 0   ;;  %s1958_s0 = inlined_call_operand.vmem [shape: bf16[2,512], index: 0, kind: input, shape index: {}]   ;;  %s1959_s1 = inlined_call_operand.vmem [shape: bf16[512,512], index: 1, kind: input, shape index: {}]   ;;  %s1960_s2 = inlined_call_operand.vmem [shape: f32[1,512], index: 2, kind: input, shape index: {}]   ;;  %s1961_s3 = inlined_call_operand.vmem [shape: f32[1,512], index: 3, kind: input, shape index: {}]   ;;  %s1962_s4 = inlined_call_operand.vmem [shape: f32[1,512], index: 4, kind: input, shape index: {}]   ;;  %s1963_s5 = inlined_call_operand.vmem [shape: f32[2,512], index: 5, kind: output, shape index: {}]  }
   0x1   :  { %s1614_s20 = smov 0  }
   0x2 LB: > { %s1195_s21 = sadd.s32 4294967295, %s1578_s20   ;;  %s1627_s22 = sadd.s32 1, %s1578_s20   ;;  %s1578_s20 = sphi %s1614_s20, %s1966_s20   ;;  %s1574_s19 = sphi %s1612_s19, %s1965_s19   ;;  %s1570_s18 = sphi %s1610_s18, %s1964_s18  }
   0x3   : > { %s40_s23 = ssub.s32 %s1578_s20, %s1627_s22  ;;  %s43_s24 = sadd.s32 1, %s1574_s19 }
   0x4   : > { %p41_p0 = scmp.eq.s32.totalorder %s40_s23, 0  ;;  %p50_p1 = scmp.ne.s32.totalorder %s1574_s19, %s1570_s18 }
   0x5   : > { %p51_p2 = scmp.eq.s32.totalorder %s1578_s20, 0  ;;  %p1198_p4 = scmp.ge.s32.totalorder %s1578_s20, 2 }
   0x6   : > { %s1636_s25 = scalar_select %p41_p0, %s1574_s19, %s43_s24  }
   0x7   : > { %p52_p3 = por %p51_p2, %p50_p1  ;;  %183 = sbr.rel (%p1198_p4) target bundleno = 80 (0x50), region = 20 }
   0xc   : > { %186 = sbr.rel (!%p52_p3) target bundleno = 80 (0x50), region = 24  ;;  %s188_s26 = sand.u32 (%p52_p3), 1, %s1574_s19  }
   0xd   : > { %s1467_s27 = sshll.u32 (%p52_p3), %s1578_s20, 3  ;;  %s1199_s28 = sshll.u32 (%p52_p3), %s188_s26, 9 }
   0xe   : > { %s1644_s6 = scalar_lea.vmem (%p52_p3), %s1959_s1, %s1467_s27  ;;  %s1649_s7 = scalar_lea.vmem (%p52_p3), [#allocation2], %s1199_s28 }
   0xf   : > { %v348_v0 = vld [vmem:[%s1644_s6] sm:$0xff] (%p52_p3)  ;;  %v350_v1 = vld [vmem:[%s1644_s6 + $0x10] sm:$0xff] (%p52_p3) }
  0x10   : > { %v352_v2 = vld [vmem:[%s1644_s6 + $0x20] sm:$0xff] (%p52_p3)  ;;  %349 = vst [vmem:[%s1649_s7] sm:$0xff] (%p52_p3), %v348_v0  ;;  %v354_v3 = vld [vmem:[%s1644_s6 + $0x30] sm:$0xff] (%p52_p3) }
  0x11   : > { %351 = vst [vmem:[%s1649_s7 + $0x8] sm:$0xff] %v350_v1  ;;  %v356_v4 = vld [vmem:[%s1644_s6 + $0x40] sm:$0xff]  ;;  %v358_v5 = vld [vmem:[%s1644_s6 + $0x50] sm:$0xff] }
  0x12   : > { %353 = vst [vmem:[%s1649_s7 + $0x10] sm:$0xff] %v352_v2  ;;  %v360_v6 = vld [vmem:[%s1644_s6 + $0x60] sm:$0xff]  ;;  %v362_v7 = vld [vmem:[%s1644_s6 + $0x70] sm:$0xff] }
  0x13   : > { %355 = vst [vmem:[%s1649_s7 + $0x18] sm:$0xff] %v354_v3  ;;  %v364_v8 = vld [vmem:[%s1644_s6 + $0x80] sm:$0xff]  ;;  %v366_v9 = vld [vmem:[%s1644_s6 + $0x90] sm:$0xff] }
  0x14   : > { %357 = vst [vmem:[%s1649_s7 + $0x20] sm:$0xff] %v356_v4  ;;  %v368_v10 = vld [vmem:[%s1644_s6 + $0xa0] sm:$0xff]  ;;  %v370_v11 = vld [vmem:[%s1644_s6 + $0xb0] sm:$0xff] }
  0x15   : > { %359 = vst [vmem:[%s1649_s7 + $0x28] sm:$0xff] %v358_v5  ;;  %v372_v12 = vld [vmem:[%s1644_s6 + $0xc0] sm:$0xff]  ;;  %v374_v13 = vld [vmem:[%s1644_s6 + $0xd0] sm:$0xff] }
  0x16   : > { %361 = vst [vmem:[%s1649_s7 + $0x30] sm:$0xff] %v360_v6  ;;  %v376_v14 = vld [vmem:[%s1644_s6 + $0xe0] sm:$0xff]  ;;  %v378_v15 = vld [vmem:[%s1644_s6 + $0xf0] sm:$0xff] }
  0x17   : > { %363 = vst [vmem:[%s1649_s7 + $0x38] sm:$0xff] %v362_v7  ;;  %v380_v16 = vld [vmem:[%s1644_s6 + $0x100] sm:$0xff]  ;;  %v382_v17 = vld [vmem:[%s1644_s6 + $0x110] sm:$0xff] }
  0x18   : > { %365 = vst [vmem:[%s1649_s7 + $0x40] sm:$0xff] %v364_v8  ;;  %v384_v18 = vld [vmem:[%s1644_s6 + $0x120] sm:$0xff]  ;;  %v386_v19 = vld [vmem:[%s1644_s6 + $0x130] sm:$0xff] }
  0x19   : > { %367 = vst [vmem:[%s1649_s7 + $0x48] sm:$0xff] %v366_v9  ;;  %v388_v20 = vld [vmem:[%s1644_s6 + $0x140] sm:$0xff]  ;;  %v390_v21 = vld [vmem:[%s1644_s6 + $0x150] sm:$0xff] }
  0x1a   : > { %369 = vst [vmem:[%s1649_s7 + $0x50] sm:$0xff] %v368_v10  ;;  %v392_v22 = vld [vmem:[%s1644_s6 + $0x160] sm:$0xff]  ;;  %v394_v23 = vld [vmem:[%s1644_s6 + $0x170] sm:$0xff] }
  0x1b   : > { %371 = vst [vmem:[%s1649_s7 + $0x58] sm:$0xff] %v370_v11  ;;  %v396_v24 = vld [vmem:[%s1644_s6 + $0x180] sm:$0xff]  ;;  %v398_v25 = vld [vmem:[%s1644_s6 + $0x190] sm:$0xff] }
  0x1c   : > { %373 = vst [vmem:[%s1649_s7 + $0x60] sm:$0xff] %v372_v12  ;;  %v400_v26 = vld [vmem:[%s1644_s6 + $0x1a0] sm:$0xff]  ;;  %v402_v27 = vld [vmem:[%s1644_s6 + $0x1b0] sm:$0xff] }
  0x1d   : > { %375 = vst [vmem:[%s1649_s7 + $0x68] sm:$0xff] %v374_v13  ;;  %v404_v28 = vld [vmem:[%s1644_s6 + $0x1c0] sm:$0xff]  ;;  %v406_v29 = vld [vmem:[%s1644_s6 + $0x1d0] sm:$0xff] }
  0x1e   : > { %377 = vst [vmem:[%s1649_s7 + $0x70] sm:$0xff] %v376_v14  ;;  %v408_v30 = vld [vmem:[%s1644_s6 + $0x1e0] sm:$0xff]  ;;  %v410_v31 = vld [vmem:[%s1644_s6 + $0x1f0] sm:$0xff] }
  0x1f   : > { %379 = vst [vmem:[%s1649_s7 + $0x78] sm:$0xff] %v378_v15  ;;  %v412_v32 = vld [vmem:[%s1644_s6 + $0x200] sm:$0xff]  ;;  %v414_v33 = vld [vmem:[%s1644_s6 + $0x210] sm:$0xff] }
  0x20   : > { %381 = vst [vmem:[%s1649_s7 + $0x80] sm:$0xff] %v380_v16  ;;  %v416_v34 = vld [vmem:[%s1644_s6 + $0x220] sm:$0xff]  ;;  %v418_v35 = vld [vmem:[%s1644_s6 + $0x230] sm:$0xff] }
  0x21   : > { %383 = vst [vmem:[%s1649_s7 + $0x88] sm:$0xff] %v382_v17  ;;  %v420_v36 = vld [vmem:[%s1644_s6 + $0x240] sm:$0xff]  ;;  %v422_v37 = vld [vmem:[%s1644_s6 + $0x250] sm:$0xff] }
  0x22   : > { %385 = vst [vmem:[%s1649_s7 + $0x90] sm:$0xff] %v384_v18  ;;  %v424_v38 = vld [vmem:[%s1644_s6 + $0x260] sm:$0xff]  ;;  %v426_v39 = vld [vmem:[%s1644_s6 + $0x270] sm:$0xff] }
  0x23   : > { %387 = vst [vmem:[%s1649_s7 + $0x98] sm:$0xff] %v386_v19  ;;  %v428_v40 = vld [vmem:[%s1644_s6 + $0x280] sm:$0xff]  ;;  %v430_v41 = vld [vmem:[%s1644_s6 + $0x290] sm:$0xff] }
  0x24   : > { %389 = vst [vmem:[%s1649_s7 + $0xa0] sm:$0xff] %v388_v20  ;;  %v432_v42 = vld [vmem:[%s1644_s6 + $0x2a0] sm:$0xff]  ;;  %v434_v43 = vld [vmem:[%s1644_s6 + $0x2b0] sm:$0xff] }
  0x25   : > { %391 = vst [vmem:[%s1649_s7 + $0xa8] sm:$0xff] %v390_v21  ;;  %v436_v44 = vld [vmem:[%s1644_s6 + $0x2c0] sm:$0xff]  ;;  %v438_v45 = vld [vmem:[%s1644_s6 + $0x2d0] sm:$0xff] }
  0x26   : > { %393 = vst [vmem:[%s1649_s7 + $0xb0] sm:$0xff] %v392_v22  ;;  %v440_v46 = vld [vmem:[%s1644_s6 + $0x2e0] sm:$0xff]  ;;  %v442_v47 = vld [vmem:[%s1644_s6 + $0x2f0] sm:$0xff] }
  0x27   : > { %395 = vst [vmem:[%s1649_s7 + $0xb8] sm:$0xff] %v394_v23  ;;  %v444_v48 = vld [vmem:[%s1644_s6 + $0x300] sm:$0xff]  ;;  %v446_v49 = vld [vmem:[%s1644_s6 + $0x310] sm:$0xff] }
  0x28   : > { %397 = vst [vmem:[%s1649_s7 + $0xc0] sm:$0xff] %v396_v24  ;;  %v448_v50 = vld [vmem:[%s1644_s6 + $0x320] sm:$0xff]  ;;  %v450_v51 = vld [vmem:[%s1644_s6 + $0x330] sm:$0xff] }
  0x29   : > { %399 = vst [vmem:[%s1649_s7 + $0xc8] sm:$0xff] %v398_v25  ;;  %v452_v52 = vld [vmem:[%s1644_s6 + $0x340] sm:$0xff]  ;;  %v454_v53 = vld [vmem:[%s1644_s6 + $0x350] sm:$0xff] }
  0x2a   : > { %401 = vst [vmem:[%s1649_s7 + $0xd0] sm:$0xff] %v400_v26  ;;  %v456_v54 = vld [vmem:[%s1644_s6 + $0x360] sm:$0xff]  ;;  %v458_v55 = vld [vmem:[%s1644_s6 + $0x370] sm:$0xff] }
  0x2b   : > { %403 = vst [vmem:[%s1649_s7 + $0xd8] sm:$0xff] %v402_v27  ;;  %v460_v56 = vld [vmem:[%s1644_s6 + $0x380] sm:$0xff]  ;;  %v462_v57 = vld [vmem:[%s1644_s6 + $0x390] sm:$0xff] }
  0x2c   : > { %405 = vst [vmem:[%s1649_s7 + $0xe0] sm:$0xff] %v404_v28  ;;  %v464_v58 = vld [vmem:[%s1644_s6 + $0x3a0] sm:$0xff]  ;;  %v466_v59 = vld [vmem:[%s1644_s6 + $0x3b0] sm:$0xff] }
  0x2d   : > { %407 = vst [vmem:[%s1649_s7 + $0xe8] sm:$0xff] %v406_v29  ;;  %v468_v60 = vld [vmem:[%s1644_s6 + $0x3c0] sm:$0xff]  ;;  %v470_v61 = vld [vmem:[%s1644_s6 + $0x3d0] sm:$0xff] }
  0x2e   : > { %409 = vst [vmem:[%s1649_s7 + $0xf0] sm:$0xff] %v408_v30  ;;  %v472_v62 = vld [vmem:[%s1644_s6 + $0x3e0] sm:$0xff]  ;;  %v474_v63 = vld [vmem:[%s1644_s6 + $0x3f0] sm:$0xff] }
  0x2f   : > { %411 = vst [vmem:[%s1649_s7 + $0xf8] sm:$0xff] %v410_v31 }
  0x30   : > { %413 = vst [vmem:[%s1649_s7 + $0x100] sm:$0xff] %v412_v32 }
  0x31   : > { %415 = vst [vmem:[%s1649_s7 + $0x108] sm:$0xff] %v414_v33 }
  0x32   : > { %417 = vst [vmem:[%s1649_s7 + $0x110] sm:$0xff] %v416_v34 }
  0x33   : > { %419 = vst [vmem:[%s1649_s7 + $0x118] sm:$0xff] %v418_v35 }
  0x34   : > { %421 = vst [vmem:[%s1649_s7 + $0x120] sm:$0xff] %v420_v36 }
  0x35   : > { %423 = vst [vmem:[%s1649_s7 + $0x128] sm:$0xff] %v422_v37 }
  0x36   : > { %425 = vst [vmem:[%s1649_s7 + $0x130] sm:$0xff] %v424_v38 }
  0x37   : > { %427 = vst [vmem:[%s1649_s7 + $0x138] sm:$0xff] %v426_v39 }
  0x38   : > { %429 = vst [vmem:[%s1649_s7 + $0x140] sm:$0xff] %v428_v40 }
  0x39   : > { %431 = vst [vmem:[%s1649_s7 + $0x148] sm:$0xff] %v430_v41 }
  0x3a   : > { %433 = vst [vmem:[%s1649_s7 + $0x150] sm:$0xff] %v432_v42 }
  0x3b   : > { %435 = vst [vmem:[%s1649_s7 + $0x158] sm:$0xff] %v434_v43 }
  0x3c   : > { %437 = vst [vmem:[%s1649_s7 + $0x160] sm:$0xff] %v436_v44 }
  0x3d   : > { %439 = vst [vmem:[%s1649_s7 + $0x168] sm:$0xff] %v438_v45 }
  0x3e   : > { %441 = vst [vmem:[%s1649_s7 + $0x170] sm:$0xff] %v440_v46 }
  0x3f   : > { %443 = vst [vmem:[%s1649_s7 + $0x178] sm:$0xff] %v442_v47 }
  0x40   : > { %445 = vst [vmem:[%s1649_s7 + $0x180] sm:$0xff] %v444_v48 }
  0x41   : > { %447 = vst [vmem:[%s1649_s7 + $0x188] sm:$0xff] %v446_v49 }
  0x42   : > { %449 = vst [vmem:[%s1649_s7 + $0x190] sm:$0xff] %v448_v50 }
  0x43   : > { %451 = vst [vmem:[%s1649_s7 + $0x198] sm:$0xff] %v450_v51 }
  0x44   : > { %453 = vst [vmem:[%s1649_s7 + $0x1a0] sm:$0xff] %v452_v52 }
  0x45   : > { %455 = vst [vmem:[%s1649_s7 + $0x1a8] sm:$0xff] %v454_v53 }
  0x46   : > { %457 = vst [vmem:[%s1649_s7 + $0x1b0] sm:$0xff] %v456_v54 }
  0x47   : > { %459 = vst [vmem:[%s1649_s7 + $0x1b8] sm:$0xff] %v458_v55 }
  0x48   : > { %461 = vst [vmem:[%s1649_s7 + $0x1c0] sm:$0xff] %v460_v56 }
  0x49   : > { %463 = vst [vmem:[%s1649_s7 + $0x1c8] sm:$0xff] %v462_v57 }
  0x4a   : > { %465 = vst [vmem:[%s1649_s7 + $0x1d0] sm:$0xff] %v464_v58 }
  0x4b   : > { %467 = vst [vmem:[%s1649_s7 + $0x1d8] sm:$0xff] %v466_v59 }
  0x4c   : > { %469 = vst [vmem:[%s1649_s7 + $0x1e0] sm:$0xff] %v468_v60 }
  0x4d   : > { %471 = vst [vmem:[%s1649_s7 + $0x1e8] sm:$0xff] %v470_v61 }
  0x4e   : > { %473 = vst [vmem:[%s1649_s7 + $0x1f0] sm:$0xff] %v472_v62 }
  0x4f   : > { %475 = vst [vmem:[%s1649_s7 + $0x1f8] sm:$0xff] %v474_v63 }
  0x50 PF: > { %p1202_p5 = scmp.ge.s32.totalorder %s1578_s20, 1  ;;  %p504_p6 = scmp.lt.s32.totalorder %s1578_s20, 3 }
  0x52   : > { %p505_p7 = pnand %p1202_p5, %p504_p6 }
  0x53   : > { %s511_s8 = sand.u32 (!%p505_p7), 1, %s1570_s18   ;;  %s1204_s13 = sshll.u32 (!%p505_p7), %s1195_s21, 1 }
  0x54   : > { %508 = sbr.rel (%p505_p7) target bundleno = 304 (0x130), region = 74  ;;  %s1203_s9 = sshll.u32 (!%p505_p7), %s511_s8, 9 }
  0x55   : > { %s1779_s10 = scalar_lea.vmem (!%p505_p7), [#allocation2], %s1203_s9  ;;  %p552_p8 = scmp.lt.s32.totalorder (!%p505_p7), %s1204_s13, 3 }
  0x59   : > { %v1267_v0 = vld [vmem:[%s1779_s10 + $0x70] sm:$0xf]  ;;  %v1483_v1 = vld [vmem:[%s1779_s10 + $0x74] sm:$0xf0]  ;;  %v1259_v11 = vld [vmem:[%s1779_s10 + $0x60] sm:$0xf] }
  0x5a   : > { %v1331_v2 = vld [vmem:[%s1779_s10 + $0xf0] sm:$0xf]  ;;  %v1268_v3 = vor.u32 %v1483_v1, %v1267_v0  ;;  %v1499_v4 = vld [vmem:[%s1779_s10 + $0xf4] sm:$0xf0]  ;;  %v1481_v13 = vld [vmem:[%s1779_s10 + $0x64] sm:$0xf0] }
  0x5b   : > { %v1395_v5 = vld [vmem:[%s1779_s10 + $0x170] sm:$0xf]  ;;  %v1515_v6 = vld [vmem:[%s1779_s10 + $0x174] sm:$0xf0]  ;;  %v1332_v7 = vor.u32 %v1499_v4, %v1331_v2  ;;  %v1323_v14 = vld [vmem:[%s1779_s10 + $0xe0] sm:$0xf]  ;;  %v1260_v16 = vor.u32 %v1481_v13, %v1259_v11 }
  0x5c   : > { %v1396_v8 = vor.u32 %v1515_v6, %v1395_v5  ;;  %v1459_v9 = vld [vmem:[%s1779_s10 + $0x1f0] sm:$0xf]  ;;  %v1531_v10 = vld [vmem:[%s1779_s10 + $0x1f4] sm:$0xf0]  ;;  %973 = vmatpush.bf16.msra.mxu0 %v1268_v3  ;;  %v1497_v15 = vld [vmem:[%s1779_s10 + $0xe4] sm:$0xf0] }
  0x5d   : > { %v1460_v12 = vor.u32 %v1531_v10, %v1459_v9  ;;  %986 = vmatpush.bf16.msra.mxu1 %v1332_v7  ;;  %v1324_v17 = vor.u32 %v1497_v15, %v1323_v14  ;;  %v1387_v18 = vld [vmem:[%s1779_s10 + $0x160] sm:$0xf]  ;;  %v1513_v19 = vld [vmem:[%s1779_s10 + $0x164] sm:$0xf0]  ;;  %v1251_v23 = vld [vmem:[%s1779_s10 + $0x50] sm:$0xf] }
  0x5e   : > { %999 = vmatpush.bf16.msra.mxu2 %v1396_v8  ;;  %v1451_v20 = vld [vmem:[%s1779_s10 + $0x1e0] sm:$0xf]  ;;  %v1388_v21 = vor.u32 %v1513_v19, %v1387_v18  ;;  %v1529_v22 = vld [vmem:[%s1779_s10 + $0x1e4] sm:$0xf0]  ;;  %v1479_v24 = vld [vmem:[%s1779_s10 + $0x54] sm:$0xf0] }
  0x5f   : > { %1012 = vmatpush.bf16.msra.mxu3 %v1460_v12  ;;  %v1452_v25 = vor.u32 %v1529_v22, %v1451_v20  ;;  %v1315_v26 = vld [vmem:[%s1779_s10 + $0xd0] sm:$0xf]  ;;  %v1495_v27 = vld [vmem:[%s1779_s10 + $0xd4] sm:$0xf0]  ;;  %v1252_v29 = vor.u32 %v1479_v24, %v1251_v23  ;;  %v1243_v35 = vld [vmem:[%s1779_s10 + $0x40] sm:$0xf] }
  0x60   : > { %v1379_v28 = vld [vmem:[%s1779_s10 + $0x150] sm:$0xf]  ;;  %974 = vmatpush.bf16.msra.mxu0 %v1260_v16  ;;  %v1511_v30 = vld [vmem:[%s1779_s10 + $0x154] sm:$0xf0]  ;;  %v1316_v33 = vor.u32 %v1495_v27, %v1315_v26  ;;  %v1477_v36 = vld [vmem:[%s1779_s10 + $0x44] sm:$0xf0] }
  0x61   : > { %v1443_v31 = vld [vmem:[%s1779_s10 + $0x1d0] sm:$0xf]  ;;  %v1527_v32 = vld [vmem:[%s1779_s10 + $0x1d4] sm:$0xf0]  ;;  %987 = vmatpush.bf16.msra.mxu1 %v1324_v17  ;;  %v1380_v34 = vor.u32 %v1511_v30, %v1379_v28  ;;  %v1307_v37 = vld [vmem:[%s1779_s10 + $0xc0] sm:$0xf]  ;;  %v1244_v44 = vor.u32 %v1477_v36, %v1243_v35 }
  0x62   : > { %1000 = vmatpush.bf16.msra.mxu2 %v1388_v21  ;;  %v1444_v38 = vor.u32 %v1527_v32, %v1443_v31  ;;  %v1493_v39 = vld [vmem:[%s1779_s10 + $0xc4] sm:$0xf0]  ;;  %v1371_v40 = vld [vmem:[%s1779_s10 + $0x140] sm:$0xf]  ;;  %v1235_v47 = vld [vmem:[%s1779_s10 + $0x30] sm:$0xf] }
  0x63   : > { %1013 = vmatpush.bf16.msra.mxu3 %v1452_v25  ;;  %v1509_v41 = vld [vmem:[%s1779_s10 + $0x144] sm:$0xf0]  ;;  %v1435_v42 = vld [vmem:[%s1779_s10 + $0x1c0] sm:$0xf]  ;;  %v1308_v45 = vor.u32 %v1493_v39, %v1307_v37  ;;  %v1475_v48 = vld [vmem:[%s1779_s10 + $0x34] sm:$0xf0] }
  0x64   : > { %v1525_v43 = vld [vmem:[%s1779_s10 + $0x1c4] sm:$0xf0]  ;;  %975 = vmatpush.bf16.msra.mxu0 %v1252_v29  ;;  %v1372_v46 = vor.u32 %v1509_v41, %v1371_v40  ;;  %v1299_v49 = vld [vmem:[%s1779_s10 + $0xb0] sm:$0xf]  ;;  %v1491_v51 = vld [vmem:[%s1779_s10 + $0xb4] sm:$0xf0]  ;;  %v1236_v56 = vor.u32 %v1475_v48, %v1235_v47 }
  0x65   : > { %988 = vmatpush.bf16.msra.mxu1 %v1316_v33  ;;  %v1436_v50 = vor.u32 %v1525_v43, %v1435_v42  ;;  %v1363_v52 = vld [vmem:[%s1779_s10 + $0x130] sm:$0xf]  ;;  %v1507_v53 = vld [vmem:[%s1779_s10 + $0x134] sm:$0xf0]  ;;  %v1300_v57 = vor.u32 %v1491_v51, %v1299_v49  ;;  %v1227_v59 = vld [vmem:[%s1779_s10 + $0x20] sm:$0xf] }
  0x66   : > { %1001 = vmatpush.bf16.msra.mxu2 %v1380_v34  ;;  %v1427_v54 = vld [vmem:[%s1779_s10 + $0x1b0] sm:$0xf]  ;;  %v1523_v55 = vld [vmem:[%s1779_s10 + $0x1b4] sm:$0xf0]  ;;  %v1364_v58 = vor.u32 %v1507_v53, %v1363_v52  ;;  %v1473_v60 = vld [vmem:[%s1779_s10 + $0x24] sm:$0xf0] }
  0x67   : > { %1014 = vmatpush.bf16.msra.mxu3 %v1444_v38  ;;  %v1291_v61 = vld [vmem:[%s1779_s10 + $0xa0] sm:$0xf]  ;;  %v1428_v62 = vor.u32 %v1523_v55, %v1427_v54  ;;  %v1489_v63 = vld [vmem:[%s1779_s10 + $0xa4] sm:$0xf0]  ;;  %v1228_v4 = vor.u32 %v1473_v60, %v1227_v59  ;;  %v1219_v7 = vld [vmem:[%s1779_s10 + $0x10] sm:$0xf] }
  0x68   : > { %976 = vmatpush.bf16.msra.mxu0 %v1244_v44  ;;  %v1355_v0 = vld [vmem:[%s1779_s10 + $0x120] sm:$0xf]  ;;  %v1505_v1 = vld [vmem:[%s1779_s10 + $0x124] sm:$0xf0]  ;;  %v1292_v5 = vor.u32 %v1489_v63, %v1291_v61  ;;  %v1471_v8 = vld [vmem:[%s1779_s10 + $0x14] sm:$0xf0] }
  0x69   : > { %989 = vmatpush.bf16.msra.mxu1 %v1308_v45  ;;  %v1419_v2 = vld [vmem:[%s1779_s10 + $0x1a0] sm:$0xf]  ;;  %v1521_v3 = vld [vmem:[%s1779_s10 + $0x1a4] sm:$0xf0]  ;;  %v1356_v6 = vor.u32 %v1505_v1, %v1355_v0  ;;  %v1283_v9 = vld [vmem:[%s1779_s10 + $0x90] sm:$0xf]  ;;  %v1220_v17 = vor.u32 %v1471_v8, %v1219_v7 }
  0x6a   : > { %1002 = vmatpush.bf16.msra.mxu2 %v1372_v46  ;;  %v1420_v10 = vor.u32 %v1521_v3, %v1419_v2  ;;  %v1487_v11 = vld [vmem:[%s1779_s10 + $0x94] sm:$0xf0]  ;;  %v1347_v12 = vld [vmem:[%s1779_s10 + $0x110] sm:$0xf]  ;;  %v1211_v16 = vld [vmem:[%s1779_s10] sm:$0xf] }
  0x6b   : > { %1015 = vmatpush.bf16.msra.mxu3 %v1436_v50  ;;  %v1503_v13 = vld [vmem:[%s1779_s10 + $0x114] sm:$0xf0]  ;;  %v1411_v14 = vld [vmem:[%s1779_s10 + $0x190] sm:$0xf]  ;;  %v1469_v18 = vld [vmem:[%s1779_s10 + $0x4] sm:$0xf0]  ;;  %v1284_v21 = vor.u32 %v1487_v11, %v1283_v9 }
  0x6c   : > { %977 = vmatpush.bf16.msra.mxu0 %v1236_v56  ;;  %v1519_v15 = vld [vmem:[%s1779_s10 + $0x194] sm:$0xf0]  ;;  %v1275_v19 = vld [vmem:[%s1779_s10 + $0x80] sm:$0xf]  ;;  %v1485_v20 = vld [vmem:[%s1779_s10 + $0x84] sm:$0xf0]  ;;  %v1348_v22 = vor.u32 %v1503_v13, %v1347_v12  ;;  %v1212_v33 = vor.u32 %v1469_v18, %v1211_v16 }
  0x6d   : > { %990 = vmatpush.bf16.msra.mxu1 %v1300_v57  ;;  %v1339_v23 = vld [vmem:[%s1779_s10 + $0x100] sm:$0xf]  ;;  %v1501_v24 = vld [vmem:[%s1779_s10 + $0x104] sm:$0xf0]  ;;  %v1412_v26 = vor.u32 %v1519_v15, %v1411_v14  ;;  %v1482_v28 = vld [vmem:[%s1779_s10 + $0x74] sm:$0xf]  ;;  %v1276_v36 = vor.u32 %v1485_v20, %v1275_v19 }
  0x6e   : > { %1003 = vmatpush.bf16.msra.mxu2 %v1364_v58  ;;  %v1403_v25 = vld [vmem:[%s1779_s10 + $0x180] sm:$0xf]  ;;  %v1517_v27 = vld [vmem:[%s1779_s10 + $0x184] sm:$0xf0]  ;;  %v1269_v29 = vld [vmem:[%s1779_s10 + $0x78] sm:$0xf0]  ;;  %v1340_v37 = vor.u32 %v1501_v24, %v1339_v23 }
  0x6f   : > { %1016 = vmatpush.bf16.msra.mxu3 %v1428_v62  ;;  %v1498_v30 = vld [vmem:[%s1779_s10 + $0xf4] sm:$0xf]  ;;  %v1333_v31 = vld [vmem:[%s1779_s10 + $0xf8] sm:$0xf0]  ;;  %v572_v32 = vld [vmem:[%s1958_s0] sm:$0xf]  ;;  %v1404_v40 = vor.u32 %v1517_v27, %v1403_v25  ;;  %v1272_v41 = vor.u32 %v1482_v28, %v1269_v29 }
  0x70   : > { %978 = vmatpush.bf16.msra.mxu0 %v1228_v4  ;;  %v1514_v34 = vld [vmem:[%s1779_s10 + $0x174] sm:$0xf]  ;;  %v1397_v35 = vld [vmem:[%s1779_s10 + $0x178] sm:$0xf0]  ;;  %644 = vst [vmem:[#allocation1] ss:$9 sm:$0xff] %v572_v32  ;;  %v1336_v42 = vor.u32 %v1498_v30, %v1333_v31 }
  0x71   : > { %991 = vmatpush.bf16.msra.mxu1 %v1292_v5  ;;  %v1530_v38 = vld [vmem:[%s1779_s10 + $0x1f4] sm:$0xf]  ;;  %v1461_v39 = vld [vmem:[%s1779_s10 + $0x1f8] sm:$0xf0]  ;;  %v1400_v43 = vor.u32 %v1514_v34, %v1397_v35  ;;  %v1480_v44 = vld [vmem:[%s1779_s10 + $0x64] sm:$0xf] }
  0x72   : > { %1004 = vmatpush.bf16.msra.mxu2 %v1356_v6  ;;  %v1261_v45 = vld [vmem:[%s1779_s10 + $0x68] sm:$0xf0]  ;;  %v1496_v46 = vld [vmem:[%s1779_s10 + $0xe4] sm:$0xf]  ;;  %v1464_v47 = vor.u32 %v1530_v38, %v1461_v39  ;;  %v1478_v53 = vld [vmem:[%s1779_s10 + $0x54] sm:$0xf] }
  0x73   : > { %1017 = vmatpush.bf16.msra.mxu3 %v1420_v10  ;;  %v1325_v48 = vld [vmem:[%s1779_s10 + $0xe8] sm:$0xf0]  ;;  %v1512_v49 = vld [vmem:[%s1779_s10 + $0x164] sm:$0xf]  ;;  %v1264_v54 = vor.u32 %v1480_v44, %v1261_v45  ;;  %v1253_v55 = vld [vmem:[%s1779_s10 + $0x58] sm:$0xf0] }
  0x74   : > { %979 = vmatpush.bf16.msra.mxu0 %v1220_v17  ;;  %v1389_v50 = vld [vmem:[%s1779_s10 + $0x168] sm:$0xf0]  ;;  %v1528_v51 = vld [vmem:[%s1779_s10 + $0x1e4] sm:$0xf]  ;;  %v1494_v56 = vld [vmem:[%s1779_s10 + $0xd4] sm:$0xf]  ;;  %v1328_v58 = vor.u32 %v1496_v46, %v1325_v48  ;;  %v1256_v5 = vor.u32 %v1478_v53, %v1253_v55 }
  0x75   : > { %992 = vmatpush.bf16.msra.mxu1 %v1284_v21  ;;  %v1453_v52 = vld [vmem:[%s1779_s10 + $0x1e8] sm:$0xf0]  ;;  %v1317_v57 = vld [vmem:[%s1779_s10 + $0xd8] sm:$0xf0]  ;;  %v1392_v59 = vor.u32 %v1512_v49, %v1389_v50  ;;  %v1510_v0 = vld [vmem:[%s1779_s10 + $0x154] sm:$0xf] }
  0x76   : > { %1005 = vmatpush.bf16.msra.mxu2 %v1348_v22  ;;  %v1456_v63 = vor.u32 %v1528_v51, %v1453_v52  ;;  %v1381_v1 = vld [vmem:[%s1779_s10 + $0x158] sm:$0xf0]  ;;  %v1526_v3 = vld [vmem:[%s1779_s10 + $0x1d4] sm:$0xf]  ;;  %v1320_v6 = vor.u32 %v1494_v56, %v1317_v57  ;;  %v1476_v8 = vld [vmem:[%s1779_s10 + $0x44] sm:$0xf] }
  0x77   : > { %1018 = vmatpush.bf16.msra.mxu3 %v1412_v26  ;;  %v1868_v60 = vld [vmem:[#allocation1 + $0x12] sm:$0xff]  ;;  %v1870_v61 = vld [vmem:[#allocation1] sm:$0xff]  ;;  %v1877_v2 = vld [vmem:[#allocation1 + $0x9] sm:$0xff]  ;;  %v1384_v7 = vor.u32 %v1510_v0, %v1381_v1  ;;  %s1968_s13 = smov (!%p552_p8, %s1204_s13), 3  ;;  %vm1102_vm2 = vcmask 1041408  }
  0x78   : > { %980 = vmatpush.bf16.msra.mxu0 %v1212_v33  ;;  %v1872_v62 = vld [vmem:[#allocation1 + $0x1b] sm:$0xff]  ;;  %v1445_v4 = vld [vmem:[%s1779_s10 + $0x1d8] sm:$0xf0]  ;;  %v1245_v9 = vld [vmem:[%s1779_s10 + $0x48] sm:$0xf0]  ;;  %s554_s16 = scalar_lea.vmem %s1960_s2, %s1968_s13  ;;  %s559_s20 = scalar_lea.vmem %s1961_s3, %s1968_s13 }
  0x79   : > { %993 = vmatpush.bf16.msra.mxu1 %v1276_v36  ;;  %v1492_v10 = vld [vmem:[%s1779_s10 + $0xc4] sm:$0xf]  ;;  %v1448_v11 = vor.u32 %v1526_v3, %v1445_v4  ;;  %v1309_v12 = vld [vmem:[%s1779_s10 + $0xc8] sm:$0xf0]  ;;  %v1248_v17 = vor.u32 %v1476_v8, %v1245_v9  ;;  %v1474_v20 = vld [vmem:[%s1779_s10 + $0x34] sm:$0xf]  ;;  %s564_s24 = scalar_lea.vmem %s1962_s4, %s1968_s13 }
  0x7a   : > { %1006 = vmatpush.bf16.msra.mxu2 %v1340_v37  ;;  %v1508_v13 = vld [vmem:[%s1779_s10 + $0x144] sm:$0xf]  ;;  %v1373_v14 = vld [vmem:[%s1779_s10 + $0x148] sm:$0xf0]  ;;  %v1312_v18 = vor.u32 %v1492_v10, %v1309_v12  ;;  %v1237_v21 = vld [vmem:[%s1779_s10 + $0x38] sm:$0xf0] }
  0x7b   : > { %1019 = vmatpush.bf16.msra.mxu3 %v1404_v40  ;;  %981 = vmatmul.bf16.vlgmr.msra.gmra.mxu0 %v1870_v61  ;;  %v1524_v15 = vld [vmem:[%s1779_s10 + $0x1c4] sm:$0xf]  ;;  %v1437_v16 = vld [vmem:[%s1779_s10 + $0x1c8] sm:$0xf0]  ;;  %v1376_v19 = vor.u32 %v1508_v13, %v1373_v14  ;;  %v1490_v22 = vld [vmem:[%s1779_s10 + $0xb4] sm:$0xf]  ;;  %v1240_v29 = vor.u32 %v1474_v20, %v1237_v21 }
  0x7c   : > { %1025 = vmatpush.bf16.msrb.mxu0 %v1272_v41  ;;  %994 = vmatmul.bf16.vlgmr.msra.gmra.mxu1 %v1877_v2  ;;  %v1440_v23 = vor.u32 %v1524_v15, %v1437_v16  ;;  %v1301_v24 = vld [vmem:[%s1779_s10 + $0xb8] sm:$0xf0]  ;;  %v1506_v25 = vld [vmem:[%s1779_s10 + $0x134] sm:$0xf]  ;;  %v1472_v32 = vld [vmem:[%s1779_s10 + $0x24] sm:$0xf] }
  0x7d   : > { %1038 = vmatpush.bf16.msrb.mxu1 %v1336_v42  ;;  %1007 = vmatmul.bf16.vlgmr.msra.gmra.mxu2 %v1868_v60  ;;  %v1365_v26 = vld [vmem:[%s1779_s10 + $0x138] sm:$0xf0]  ;;  %v1522_v27 = vld [vmem:[%s1779_s10 + $0x1b4] sm:$0xf]  ;;  %v1304_v30 = vor.u32 %v1490_v22, %v1301_v24  ;;  %v1229_v33 = vld [vmem:[%s1779_s10 + $0x28] sm:$0xf0] }
  0x7e   : > { %1051 = vmatpush.bf16.msrb.mxu2 %v1400_v43  ;;  %1020 = vmatmul.bf16.vlgmr.msra.gmra.mxu3 %v1872_v62  ;;  %v1429_v28 = vld [vmem:[%s1779_s10 + $0x1b8] sm:$0xf0]  ;;  %v1368_v31 = vor.u32 %v1506_v25, %v1365_v26  ;;  %v1488_v34 = vld [vmem:[%s1779_s10 + $0xa4] sm:$0xf]  ;;  %v1293_v36 = vld [vmem:[%s1779_s10 + $0xa8] sm:$0xf0]  ;;  %v1232_v41 = vor.u32 %v1472_v32, %v1229_v33 }
  0x7f   : > { %1064 = vmatpush.bf16.msrb.mxu3 %v1464_v47  ;;  %v1432_v35 = vor.u32 %v1522_v27, %v1429_v28  ;;  %v1504_v37 = vld [vmem:[%s1779_s10 + $0x124] sm:$0xf]  ;;  %v1357_v38 = vld [vmem:[%s1779_s10 + $0x128] sm:$0xf0]  ;;  %v1296_v42 = vor.u32 %v1488_v34, %v1293_v36  ;;  %v1470_v44 = vld [vmem:[%s1779_s10 + $0x14] sm:$0xf] }
  0x80   : > { %1026 = vmatpush.bf16.msrb.mxu0 %v1264_v54  ;;  %v1520_v39 = vld [vmem:[%s1779_s10 + $0x1a4] sm:$0xf]  ;;  %v1421_v40 = vld [vmem:[%s1779_s10 + $0x1a8] sm:$0xf0]  ;;  %v1360_v43 = vor.u32 %v1504_v37, %v1357_v38  ;;  %v1221_v45 = vld [vmem:[%s1779_s10 + $0x18] sm:$0xf0] }
  0x81   : > { %1039 = vmatpush.bf16.msrb.mxu1 %v1328_v58  ;;  %v1486_v46 = vld [vmem:[%s1779_s10 + $0x94] sm:$0xf]  ;;  %v1424_v47 = vor.u32 %v1520_v39, %v1421_v40  ;;  %v1285_v48 = vld [vmem:[%s1779_s10 + $0x98] sm:$0xf0]  ;;  %v1224_v53 = vor.u32 %v1470_v44, %v1221_v45  ;;  %v1468_v56 = vld [vmem:[%s1779_s10 + $0x4] sm:$0xf] }
  0x82   : > { %1052 = vmatpush.bf16.msrb.mxu2 %v1392_v59  ;;  %v1502_v49 = vld [vmem:[%s1779_s10 + $0x114] sm:$0xf]  ;;  %v1349_v50 = vld [vmem:[%s1779_s10 + $0x118] sm:$0xf0]  ;;  %v1288_v54 = vor.u32 %v1486_v46, %v1285_v48  ;;  %v1213_v57 = vld [vmem:[%s1779_s10 + $0x8] sm:$0xf0] }
  0x83   : > { %1065 = vmatpush.bf16.msrb.mxu3 %v1456_v63  ;;  %v1518_v51 = vld [vmem:[%s1779_s10 + $0x194] sm:$0xf]  ;;  %v1413_v52 = vld [vmem:[%s1779_s10 + $0x198] sm:$0xf0]  ;;  %v1352_v55 = vor.u32 %v1502_v49, %v1349_v50  ;;  %v1484_v58 = vld [vmem:[%s1779_s10 + $0x84] sm:$0xf] }
  0x84   : > { %1027 = vmatpush.bf16.msrb.mxu0 %v1256_v5  ;;  %v1416_v59 = vor.u32 %v1518_v51, %v1413_v52  ;;  %v1277_v63 = vld [vmem:[%s1779_s10 + $0x88] sm:$0xf0]  ;;  %v1500_v0 = vld [vmem:[%s1779_s10 + $0x104] sm:$0xf]  ;;  %v1216_v5 = vor.u32 %v1468_v56, %v1213_v57  ;;  %v1077_v20 = vld [vmem:[%s559_s20] sm:$0x3] }
  0x85   : > { %1040 = vmatpush.bf16.msrb.mxu1 %v1320_v6  ;;  %v1341_v1 = vld [vmem:[%s1779_s10 + $0x108] sm:$0xf0]  ;;  %v1516_v3 = vld [vmem:[%s1779_s10 + $0x184] sm:$0xf]  ;;  %v1280_v6 = vor.u32 %v1484_v58, %v1277_v63  ;;  %v1079_v24 = vperm.slane %v1077_v20, 0  ;;  %v1080_v32 = vperm.slane %v1077_v20, 1 }
  0x86   : > { %1053 = vmatpush.bf16.msrb.mxu2 %v1384_v7  ;;  %v1405_v4 = vld [vmem:[%s1779_s10 + $0x188] sm:$0xf0]  ;;  %v1344_v7 = vor.u32 %v1500_v0, %v1341_v1  ;;  %v1085_v26 = vld [vmem:[%s564_s24] sm:$0x3]  ;;  %s1208_s26 = sshll.u32 %s1968_s13, 1 }
  0x87   : > { %1066 = vmatpush.bf16.msrb.mxu3 %v1448_v11  ;;  %v1408_v8 = vor.u32 %v1516_v3, %v1405_v4  ;;  %v1088_v36 = vperm.slane %v1085_v26, 1  ;;  %s570_s29 = scalar_lea.vmem %s1963_s5, %s1208_s26 }
  0x88   : > { %1028 = vmatpush.bf16.msrb.mxu0 %v1248_v17 }
  0x89   : > { %1041 = vmatpush.bf16.msrb.mxu1 %v1312_v18 }
  0x8a   : > { %1054 = vmatpush.bf16.msrb.mxu2 %v1376_v19 }
  0x8b   : > { %1067 = vmatpush.bf16.msrb.mxu3 %v1440_v23 }
  0x8c   : > { %1029 = vmatpush.bf16.msrb.mxu0 %v1240_v29  ;;  %v1087_v29 = vperm.slane %v1085_v26, 0 }
  0x8d   : > { %1042 = vmatpush.bf16.msrb.mxu1 %v1304_v30 }
  0x8e   : > { %1055 = vmatpush.bf16.msrb.mxu2 %v1368_v31 }
  0x8f   : > { %1068 = vmatpush.bf16.msrb.mxu3 %v1432_v35 }
  0x90   : > { %1030 = vmatpush.bf16.msrb.mxu0 %v1232_v41 }
  0x91   : > { %1043 = vmatpush.bf16.msrb.mxu1 %v1296_v42 }
  0x92   : > { %1056 = vmatpush.bf16.msrb.mxu2 %v1360_v43 }
  0x93   : > { %1069 = vmatpush.bf16.msrb.mxu3 %v1424_v47 }
  0x94   : > { %1031 = vmatpush.bf16.msrb.mxu0 %v1224_v53 }
  0x95   : > { %1044 = vmatpush.bf16.msrb.mxu1 %v1288_v54 }
  0x96   : > { %1057 = vmatpush.bf16.msrb.mxu2 %v1352_v55 }
  0x97   : > { %1070 = vmatpush.bf16.msrb.mxu3 %v1416_v59 }
  0x98   : > { %1032 = vmatpush.bf16.msrb.mxu0 %v1216_v5 }
  0x99   : > { %1045 = vmatpush.bf16.msrb.mxu1 %v1280_v6 }
  0x9a   : > { %1058 = vmatpush.bf16.msrb.mxu2 %v1344_v7 }
  0x9b   : > { %1071 = vmatpush.bf16.msrb.mxu3 %v1408_v8  ;;  %1033 = vmatmul.bf16.vlgmr.msrb.gmra.mxu0 %v1870_v61 }
  0x9c   : > { %1046 = vmatmul.bf16.vlgmr.msrb.gmra.mxu1 %v1877_v2 }
  0x9d   : > { %1059 = vmatmul.bf16.vlgmr.msrb.gmra.mxu2 %v1868_v60  ;;  %v637_v60 = vld [vmem:[%s554_s16] sm:$0x3] }
  0x9e   : > { %1072 = vmatmul.bf16.vlgmr.msrb.gmra.mxu3 %v1872_v62  ;;  %v639_v14 = vperm.slane %v637_v60, 0  ;;  %v640_v17 = vperm.slane %v637_v60, 1 }
  0xf8   : > { %v982_v9 = vpop.f32.mrf.mxu0 }
  0xf9   : > { %v995_v10 = vpop.f32.mrf.mxu1  ;;  %v983_v15 = vadd.f32 %v982_v9, %v639_v14 }
  0xfb   : > { %v996_v16 = vadd.f32 %v995_v10, %v983_v15 }
 0x100   : > { %v1008_v11 = vpop.f32.mrf.mxu2  ;;  %v984_v13 = vpop.f32.mrf.mxu0 }
 0x101   : > { %v1021_v12 = vpop.f32.mrf.mxu3  ;;  %v997_v61 = vpop.f32.mrf.mxu1  ;;  %v1009_v18 = vadd.f32 %v1008_v11, %v996_v16 }
 0x103   : > { %v1022_v23 = vadd.f32 %v1021_v12, %v1009_v18 }
 0x105   : > { %v1083_v28 = vmul.f32 %v1079_v24, %v1022_v23 }
 0x107   : > { %v1091_v37 = vadd.f32 %v1087_v29, %v1083_v28 }
 0x108   : > { %v1010_v62 = vpop.f32.mrf.mxu2 }
 0x109   : > { %v1023_v2 = vpop.f32.mrf.mxu3  ;;  %v1095_v41 = vmul.f32 0.01, %v1091_v37  ;;  %vm1093_vm1 = vcmp.ge.f32.partialorder %v1091_v37, 0.0 }
 0x10b   : > { %v1097_v46 = vsel %vm1093_vm1, %v1091_v37, %v1095_v41 }
 0x118   : > { %v1034_v19 = vpop.f32.mrf.mxu0 }
 0x119   : > { %v1035_v21 = vadd.f32 %v1034_v19, %v640_v17  ;;  %v1047_v22 = vpop.f32.mrf.mxu1 }
 0x11b   : > { %v1048_v25 = vadd.f32 %v1047_v22, %v1035_v21 }
 0x120   : > { %v1060_v27 = vpop.f32.mrf.mxu2  ;;  %v1036_v33 = vpop.f32.mrf.mxu0 }
 0x121   : > { %v1061_v30 = vadd.f32 %v1060_v27, %v1048_v25  ;;  %v1073_v31 = vpop.f32.mrf.mxu3  ;;  %v1049_v34 = vpop.f32.mrf.mxu1 }
 0x123   : > { %v1074_v35 = vadd.f32 %v1073_v31, %v1061_v30 }
 0x125   : > { %v1084_v38 = vmul.f32 %v1080_v32, %v1074_v35 }
 0x127   : > { %v1092_v39 = vadd.f32 %v1088_v36, %v1084_v38 }
 0x128   : > { %v1062_v40 = vpop.f32.mrf.mxu2 }
 0x129   : > { %vm1094_vm0 = vcmp.ge.f32.partialorder %v1092_v39, 0.0  ;;  %v1096_v42 = vmul.f32 0.01, %v1092_v39  ;;  %v1075_v43 = vpop.f32.mrf.mxu3 }
 0x12b   : > { %v1098_v44 = vsel %vm1094_vm0, %v1092_v39, %v1096_v42 }
 0x12c   : > { %v1101_v45 = vrot.slane %v1098_v44, 6 }
 0x12e   : > { %v1103_v47 = vsel %vm1102_vm2, %v1097_v46, %v1101_v45 }
 0x12f   : > { %1105 = vst [vmem:[%s570_s29] sm:$0xf] %v1103_v47 }
 0x130 PF: > { %p12_p9 = scmp.ge.s32.totalorder %s1627_s22, 4   ;;  %s1964_s18 = smov %s1574_s19 }
 0x131   : > { %s1965_s19 = smov %s1636_s25  ;;  %s1966_s20 = smov %s1627_s22 }
 0x132   :  { %14 = sbr.rel (!%p12_p9) target bundleno = 2 (0x2), region = 122 }

</bundles_post_ra>
